<compile_context>
chip_gen: v5e
topology: v5e:2x2
jax: 0.10.0
libtpu: 0.0.40
codegen_flags: <defaults>
</compile_context>

<pallas_src>
import math

import jax
import jax.numpy as jnp
import numpy as np
from jax.experimental import pallas as pl
from jax.experimental.pallas import tpu as pltpu

# ---------------------------------------------------------------------------
# Problem sizes (small, consistent with the module's forward).  The norm=None
# branch only type-checks when kernel_s's RFF feature dim equals the per-loss
# batch size N, so DFS = N.
# ---------------------------------------------------------------------------
N = 16             # per-instance batch size
DZ = 32            # representation (z) feature dim
DFZ = 64           # RFF feature dim of kernel_z
NUM_CLASSES = 4    # onehot_num_classes (one_hot_s=True)
DFS = N            # RFF feature dim of kernel_s (must equal N)
LANES = 128        # lane-dense output row width

assert DFS == N, "norm=None branch requires kernel_s RFF dim == batch size"


def _eodep_kernel(sy_ref, z_ref, wz_ref, bz_ref, wsb_ref, out_ref):
    """One grid step = one loss instance: RFF maps + matmul + Frobenius norm."""
    scale_z = math.sqrt(2.0 / DFZ)
    scale_s = math.sqrt(2.0 / DFS)

    # phi_z = sqrt(2/DFZ) * cos(z @ Wz + bz)                     (N, DFZ)
    z = z_ref[0]                                                 # (N, DZ)
    phi_z = scale_z * jnp.cos(
        jnp.dot(z, wz_ref[...], preferred_element_type=jnp.float32)
        + bz_ref[...])

    # phi_s: one_hot(s) @ Ws + bs is just a row-select of (Ws + bs).
    # NUM_CLASSES = 4 -> static-unrolled broadcast compare+select on the VPU,
    # with a single wsb load sliced in-register.
    sy = sy_ref[0]                                               # (N, 2) int32
    s_col = sy[:, 0:1]                                           # (N, 1)
    y_col = sy[:, 1:2]                                           # (N, 1)
    wsb = wsb_ref[...]                                           # (NUM_CLASSES, DFS)
    sel = jnp.zeros((N, DFS), jnp.float32)
    for c in range(NUM_CLASSES):                                 # static unroll
        sel = jnp.where(s_col == c, wsb[c:c + 1, :], sel)
    mask = (y_col == 1).astype(jnp.float32)                      # mask = (y == 1)
    phi_s_m = mask * (scale_s * jnp.cos(sel))                    # (N, DFS)

    # C^T = phi_s_m @ phi_z: same Frobenius norm as phi_z.T @ phi_s_m.T, but a
    # native [N,DFS]x[N,DFZ] MXU matmul with no transposes / XLU traffic.
    ct = jnp.dot(phi_s_m, phi_z, preferred_element_type=jnp.float32)  # (N, DFZ)
    frob = jnp.sqrt(jnp.sum(ct * ct))

    # Lane-dense scalar write-back: broadcast into the full 128-lane output row.
    out_ref[...] = jnp.broadcast_to(frob, (1, 1, LANES))


def prepare_rff_params(wz, bz, ws, bs):
    """Per-model prep, hoisted out of the forward path (depends only on params)."""
    wz32 = jnp.asarray(wz, jnp.float32).reshape(DZ, DFZ)
    bz32 = jnp.asarray(bz, jnp.float32).reshape(1, DFZ)
    wsb = (jnp.asarray(ws, jnp.float32)
           + jnp.asarray(bs, jnp.float32)).reshape(NUM_CLASSES, DFS)
    return wz32, bz32, wsb


@jax.jit
def eodep_loss2_batched(z, s_int, y, wz32, bz32, wsb):
    """B independent EODEPLoss2 forwards in one pallas_call (grid over B)."""
    B = z.shape[0]
    # (s, y) packed into one small int32 operand per instance.
    sy = jnp.stack([s_int.astype(jnp.int32), y.astype(jnp.int32)], axis=-1)  # (B,N,2)
    out = pl.pallas_call(
        _eodep_kernel,
        out_shape=jax.ShapeDtypeStruct((B, 1, LANES), jnp.float32),
        grid=(B,),
        in_specs=[
            pl.BlockSpec((1, N, 2), lambda b: (b, 0, 0)),          # (s, y): streams
            pl.BlockSpec((1, N, DZ), lambda b: (b, 0, 0)),         # z: streams
            pl.BlockSpec((DZ, DFZ), lambda b: (0, 0)),             # Wz: grid-resident
            pl.BlockSpec((1, DFZ), lambda b: (0, 0)),              # bz: grid-resident
            pl.BlockSpec((NUM_CLASSES, DFS), lambda b: (0, 0)),    # Ws+bs: resident
        ],
        out_specs=pl.BlockSpec((1, 1, LANES), lambda b: (b, 0, 0)),
        compiler_params=pltpu.CompilerParams(
            dimension_semantics=("parallel",)),
    )(sy, z.astype(jnp.float32), wz32, bz32, wsb)
    return out[:, 0, 0]                                            # (B,)


def eodep_loss2(z, s_int, y, wz32, bz32, wsb):
    """Single-instance forward (module-equivalent API): batched path with B=1."""
    return eodep_loss2_batched(z[None], s_int[None], y[None], wz32, bz32, wsb)[0]


def _reference_single(z, s_int, y, wz, bz, ws, bs):
    """Plain-NumPy f64 reference mirroring the torch forward (norm=None)."""
    z = np.asarray(z, np.float64)
    wz = np.asarray(wz, np.float64)
    bz = np.asarray(bz, np.float64)
    ws = np.asarray(ws, np.float64)
    bs = np.asarray(bs, np.float64)
    s_oh = np.eye(NUM_CLASSES, dtype=np.float64)[np.asarray(s_int)]
    mask = np.asarray(y) == 1
    phi_s = math.sqrt(2.0 / DFS) * np.cos(s_oh[mask] @ ws + bs)   # (m, DFS)
    phi_z = math.sqrt(2.0 / DFZ) * np.cos(z @ wz + bz)            # (N, DFZ)
    c = phi_z.T @ phi_s.T                                         # (DFZ, m)
    return np.sqrt(np.sum(c * c))


if __name__ == "__main__":
    key = jax.random.PRNGKey(0)
    k_z, k_s, k_y, k_wz, k_bz, k_ws, k_bs = jax.random.split(key, 7)

    # B independent loss instances batched over the grid axis.
    B = 8
    z = jax.random.normal(k_z, (B, N, DZ), dtype=jnp.float32)
    s_int = jax.random.randint(k_s, (B, N), 0, NUM_CLASSES, dtype=jnp.int32)
    y = jax.random.randint(k_y, (B, N), 0, 2, dtype=jnp.int32)    # binary targets

    # Deterministic RFF kernel parameters (synthetic, not a checkpoint).
    sigma_z, sigma_s = 1.0, 1.0
    wz = jax.random.normal(k_wz, (DZ, DFZ), dtype=jnp.float32) / sigma_z
    bz = jax.random.uniform(k_bz, (1, DFZ), dtype=jnp.float32) * (2.0 * math.pi)
    ws = jax.random.normal(k_ws, (NUM_CLASSES, DFS), dtype=jnp.float32) / sigma_s
    bs = jax.random.uniform(k_bs, (1, DFS), dtype=jnp.float32) * (2.0 * math.pi)

    params = prepare_rff_params(wz, bz, ws, bs)   # hoisted once per model

    losses = eodep_loss2_batched(z, s_int, y, *params)
    losses = jax.block_until_ready(losses)

    for b in range(B):
        ref = _reference_single(z[b], s_int[b], y[b], wz, bz, ws, bs)
        np.testing.assert_allclose(np.asarray(losses[b]), ref, rtol=1e-4, atol=1e-5)

    # Module-equivalent single-instance forward also works (B=1 grid).
    single = jax.block_until_ready(eodep_loss2(z[0], s_int[0], y[0], *params))
    np.testing.assert_allclose(
        np.asarray(single),
        _reference_single(z[0], s_int[0], y[0], wz, bz, ws, bs),
        rtol=1e-4, atol=1e-5)

    print("KERNEL_OK")
</pallas_src>

<mosaic_0001>
module attributes {stable_mosaic.version = 11 : i64} {
  func.func @_eodep_kernel(%arg0: i32, %arg1: memref<1x16x2xi32, #tpu.memory_space<vmem>>, %arg2: memref<1x16x32xf32, #tpu.memory_space<vmem>>, %arg3: memref<32x64xf32, #tpu.memory_space<vmem>>, %arg4: memref<1x64xf32, #tpu.memory_space<vmem>>, %arg5: memref<4x16xf32, #tpu.memory_space<vmem>>, %arg6: memref<1x1x128xf32, #tpu.memory_space<vmem>>) attributes {dimension_semantics = [#tpu.dimension_semantics<parallel>], iteration_bounds = array<i64: 8>, scalar_prefetch = 0 : i64, scratch_operands = 0 : i64, tpu.core_type = #tpu.core_type<tc>, window_params = [{transform_indices = @transform_0, window_bounds = array<i64: 1, 16, 2>}, {transform_indices = @transform_1, window_bounds = array<i64: 1, 16, 32>}, {pipeline_mode = #tpu.pipeline_mode<synchronous>, transform_indices = @transform_2, window_bounds = array<i64: 32, 64>}, {pipeline_mode = #tpu.pipeline_mode<synchronous>, transform_indices = @transform_3, window_bounds = array<i64: 1, 64>}, {pipeline_mode = #tpu.pipeline_mode<synchronous>, transform_indices = @transform_4, window_bounds = array<i64: 4, 16>}, {transform_indices = @transform_5, window_bounds = array<i64: 1, 1, 128>}]} {
    %c0 = arith.constant 0 : index
    %c0_0 = arith.constant 0 : index
    %c0_1 = arith.constant 0 : index
    %0 = vector.load %arg2[%c0, %c0_0, %c0_1] : memref<1x16x32xf32, #tpu.memory_space<vmem>>, vector<1x16x32xf32>
    %1 = vector.shape_cast %0 : vector<1x16x32xf32> to vector<16x32xf32>
    %c0_2 = arith.constant 0 : index
    %c0_3 = arith.constant 0 : index
    %2 = vector.load %arg3[%c0_2, %c0_3] : memref<32x64xf32, #tpu.memory_space<vmem>>, vector<32x64xf32>
    %cst = arith.constant dense<0.000000e+00> : vector<16x64xf32>
    %3 = tpu.matmul %1, %2, %cst {dimension_numbers = #tpu.dot_dimension_numbers<[1], [0], [0], [1], [0, 0, 1, 1], [], []>} : vector<16x32xf32>, vector<32x64xf32>, vector<16x64xf32> -> vector<16x64xf32>
    %c0_4 = arith.constant 0 : index
    %c0_5 = arith.constant 0 : index
    %4 = vector.load %arg4[%c0_4, %c0_5] : memref<1x64xf32, #tpu.memory_space<vmem>>, vector<1x64xf32>
    %5 = vector.broadcast %4 : vector<1x64xf32> to vector<16x64xf32>
    %6 = arith.addf %3, %5 : vector<16x64xf32>
    %7 = math.cos %6 : vector<16x64xf32>
    %cst_6 = arith.constant 0.176776692 : f32
    %8 = vector.broadcast %cst_6 : f32 to vector<16x64xf32>
    %9 = arith.mulf %8, %7 : vector<16x64xf32>
    %c0_7 = arith.constant 0 : index
    %c0_8 = arith.constant 0 : index
    %c0_9 = arith.constant 0 : index
    %10 = vector.load %arg1[%c0_7, %c0_8, %c0_9] : memref<1x16x2xi32, #tpu.memory_space<vmem>>, vector<1x16x2xi32>
    %11 = vector.shape_cast %10 : vector<1x16x2xi32> to vector<16x2xi32>
    %12 = vector.extract_strided_slice %11 {offsets = [0, 0], sizes = [16, 1], strides = [1, 1]} : vector<16x2xi32> to vector<16x1xi32>
    %13 = vector.extract_strided_slice %11 {offsets = [0, 1], sizes = [16, 1], strides = [1, 1]} : vector<16x2xi32> to vector<16x1xi32>
    %c0_10 = arith.constant 0 : index
    %c0_11 = arith.constant 0 : index
    %14 = vector.load %arg5[%c0_10, %c0_11] : memref<4x16xf32, #tpu.memory_space<vmem>>, vector<4x16xf32>
    %cst_12 = arith.constant 0.000000e+00 : f32
    %15 = vector.broadcast %cst_12 : f32 to vector<16x16xf32>
    %c0_i32 = arith.constant 0 : i32
    %16 = vector.broadcast %c0_i32 : i32 to vector<16x1xi32>
    %17 = arith.cmpi eq, %12, %16 : vector<16x1xi32>
    %18 = vector.extract_strided_slice %14 {offsets = [0, 0], sizes = [1, 16], strides = [1, 1]} : vector<4x16xf32> to vector<1x16xf32>
    %19 = vector.shape_cast %17 : vector<16x1xi1> to vector<16x1xi1>
    %20 = vector.broadcast %19 : vector<16x1xi1> to vector<16x16xi1>
    %21 = vector.shape_cast %18 : vector<1x16xf32> to vector<1x16xf32>
    %22 = vector.broadcast %21 : vector<1x16xf32> to vector<16x16xf32>
    %23 = arith.select %20, %22, %15 : vector<16x16xi1>, vector<16x16xf32>
    %c1_i32 = arith.constant 1 : i32
    %24 = vector.broadcast %c1_i32 : i32 to vector<16x1xi32>
    %25 = arith.cmpi eq, %12, %24 : vector<16x1xi32>
    %26 = vector.extract_strided_slice %14 {offsets = [1, 0], sizes = [1, 16], strides = [1, 1]} : vector<4x16xf32> to vector<1x16xf32>
    %27 = vector.shape_cast %25 : vector<16x1xi1> to vector<16x1xi1>
    %28 = vector.broadcast %27 : vector<16x1xi1> to vector<16x16xi1>
    %29 = vector.shape_cast %26 : vector<1x16xf32> to vector<1x16xf32>
    %30 = vector.broadcast %29 : vector<1x16xf32> to vector<16x16xf32>
    %31 = arith.select %28, %30, %23 : vector<16x16xi1>, vector<16x16xf32>
    %c2_i32 = arith.constant 2 : i32
    %32 = vector.broadcast %c2_i32 : i32 to vector<16x1xi32>
    %33 = arith.cmpi eq, %12, %32 : vector<16x1xi32>
    %34 = vector.extract_strided_slice %14 {offsets = [2, 0], sizes = [1, 16], strides = [1, 1]} : vector<4x16xf32> to vector<1x16xf32>
    %35 = vector.shape_cast %33 : vector<16x1xi1> to vector<16x1xi1>
    %36 = vector.broadcast %35 : vector<16x1xi1> to vector<16x16xi1>
    %37 = vector.shape_cast %34 : vector<1x16xf32> to vector<1x16xf32>
    %38 = vector.broadcast %37 : vector<1x16xf32> to vector<16x16xf32>
    %39 = arith.select %36, %38, %31 : vector<16x16xi1>, vector<16x16xf32>
    %c3_i32 = arith.constant 3 : i32
    %40 = vector.broadcast %c3_i32 : i32 to vector<16x1xi32>
    %41 = arith.cmpi eq, %12, %40 : vector<16x1xi32>
    %42 = vector.extract_strided_slice %14 {offsets = [3, 0], sizes = [1, 16], strides = [1, 1]} : vector<4x16xf32> to vector<1x16xf32>
    %43 = vector.shape_cast %41 : vector<16x1xi1> to vector<16x1xi1>
    %44 = vector.broadcast %43 : vector<16x1xi1> to vector<16x16xi1>
    %45 = vector.shape_cast %42 : vector<1x16xf32> to vector<1x16xf32>
    %46 = vector.broadcast %45 : vector<1x16xf32> to vector<16x16xf32>
    %47 = arith.select %44, %46, %39 : vector<16x16xi1>, vector<16x16xf32>
    %c1_i32_13 = arith.constant 1 : i32
    %48 = vector.broadcast %c1_i32_13 : i32 to vector<16x1xi32>
    %49 = arith.cmpi eq, %13, %48 : vector<16x1xi32>
    %50 = arith.extui %49 : vector<16x1xi1> to vector<16x1xi32>
    %51 = arith.sitofp %50 : vector<16x1xi32> to vector<16x1xf32>
    %52 = math.cos %47 : vector<16x16xf32>
    %cst_14 = arith.constant 0.353553385 : f32
    %53 = vector.broadcast %cst_14 : f32 to vector<16x16xf32>
    %54 = arith.mulf %53, %52 : vector<16x16xf32>
    %55 = vector.broadcast %51 : vector<16x1xf32> to vector<16x16xf32>
    %56 = arith.mulf %55, %54 : vector<16x16xf32>
    %cst_15 = arith.constant dense<0.000000e+00> : vector<16x64xf32>
    %57 = tpu.matmul %56, %9, %cst_15 {dimension_numbers = #tpu.dot_dimension_numbers<[1], [0], [0], [1], [0, 0, 1, 1], [], []>} : vector<16x16xf32>, vector<16x64xf32>, vector<16x64xf32> -> vector<16x64xf32>
    %58 = arith.mulf %57, %57 : vector<16x64xf32>
    %59 = vector.shape_cast %58 : vector<16x64xf32> to vector<1x16x64xf32>
    %cst_16 = arith.constant dense<0.000000e+00> : vector<1xf32>
    %60 = vector.multi_reduction <add>, %59, %cst_16 [1, 2] : vector<1x16x64xf32> to vector<1xf32>
    %61 = vector.shape_cast %60 : vector<1xf32> to vector<1x1x1xf32>
    %62 = vector.extract %61[0, 0, 0] : f32 from vector<1x1x1xf32>
    %63 = math.sqrt %62 : f32
    %64 = vector.broadcast %63 : f32 to vector<1x1x128xf32>
    %c0_17 = arith.constant 0 : index
    %c0_18 = arith.constant 0 : index
    %c0_19 = arith.constant 0 : index
    %65 = vector.load %arg6[%c0_17, %c0_18, %c0_19] : memref<1x1x128xf32, #tpu.memory_space<vmem>>, vector<1x1x128xf32>
    tpu.vector_store %arg6[%c0_17, %c0_18, %c0_19], %64 {strides = array<i32>} : memref<1x1x128xf32, #tpu.memory_space<vmem>>, vector<1x1x128xf32>,
    return
  }
  func.func @transform_0(%arg0: i32) -> (i32, i32, i32) {
    %c0_i32 = arith.constant 0 : i32
    %c0_i32_0 = arith.constant 0 : i32
    %c0_i32_1 = arith.constant 0 : i32
    return %arg0, %c0_i32, %c0_i32_0 : i32, i32, i32
  }
  func.func @transform_1(%arg0: i32) -> (i32, i32, i32) {
    %c0_i32 = arith.constant 0 : i32
    %c0_i32_0 = arith.constant 0 : i32
    %c0_i32_1 = arith.constant 0 : i32
    return %arg0, %c0_i32, %c0_i32_0 : i32, i32, i32
  }
  func.func @transform_2(%arg0: i32) -> (i32, i32) {
    %c0_i32 = arith.constant 0 : i32
    %c0_i32_0 = arith.constant 0 : i32
    %c0_i32_1 = arith.constant 0 : i32
    return %c0_i32, %c0_i32_0 : i32, i32
  }
  func.func @transform_3(%arg0: i32) -> (i32, i32) {
    %c0_i32 = arith.constant 0 : i32
    %c0_i32_0 = arith.constant 0 : i32
    %c0_i32_1 = arith.constant 0 : i32
    return %c0_i32, %c0_i32_0 : i32, i32
  }
  func.func @transform_4(%arg0: i32) -> (i32, i32) {
    %c0_i32 = arith.constant 0 : i32
    %c0_i32_0 = arith.constant 0 : i32
    %c0_i32_1 = arith.constant 0 : i32
    return %c0_i32, %c0_i32_0 : i32, i32
  }
  func.func @transform_5(%arg0: i32) -> (i32, i32, i32) {
    %c0_i32 = arith.constant 0 : i32
    %c0_i32_0 = arith.constant 0 : i32
    %c0_i32_1 = arith.constant 0 : i32
    return %arg0, %c0_i32, %c0_i32_0 : i32, i32, i32
  }
}

</mosaic_0001>

<bundles_post_ra>
// kernel: eodep_loss2_batched.1
= control target key start
LH: loop header
LB: loop body
LE: loop exit
PB: predicated region body
PF: predicated region fallthrough
CT: control target
= control target key end

     0   :  { %s1211_s18 = smov 0   ;;  %s1767_s0 = inlined_call_operand.vmem [shape: s32[8,16,2], index: 0, kind: input, shape index: {}]   ;;  %s1768_s1 = inlined_call_operand.vmem [shape: f32[8,16,32], index: 1, kind: input, shape index: {}]   ;;  %s1769_s2 = inlined_call_operand.vmem [shape: f32[32,64], index: 2, kind: input, shape index: {}]   ;;  %s1770_s3 = inlined_call_operand.vmem [shape: f32[1,64], index: 3, kind: input, shape index: {}]   ;;  %s1771_s4 = inlined_call_operand.vmem [shape: f32[4,16], index: 4, kind: input, shape index: {}]   ;;  %s1772_s5 = inlined_call_operand.vmem [shape: f32[8,1,128], index: 5, kind: output, shape index: {}]  }
   0x1 LB: > { %s1098_s19 = sadd.s32 4294967295, %s1170_s18   ;;  %p1102_p0 = scmp.ge.s32.totalorder %s1170_s18, 1  ;;  %s1170_s18 = sphi %s1211_s18, %s15_s18  }
   0x2   : > { %p197_p1 = scmp.lt.s32.totalorder %s1170_s18, 9 }
   0x4   : > { %p198_p2 = pnand %p1102_p0, %p197_p1 }
   0x5   : > { %p228_p3 = scmp.lt.s32.totalorder (!%p198_p2), %s1098_s19, 7 }
   0x6   : > { %201 = sbr.rel (%p198_p2) target bundleno = 716 (0x2cc), region = 40 }
   0xb   : > { %v246_v0 = vld [vmem:[%s1769_s2 + $0x18] sm:$0xff]  ;;  %v245_v1 = vld [vmem:[%s1769_s2 + $0x10] sm:$0xff]  ;;  %v244_v2 = vld [vmem:[%s1769_s2 + $0x8] sm:$0xff]  ;;  %v1172_v3 = vmov 0   ;;  %s1782_s19 = smov (!%p228_p3, %s1098_s19), 7  ;;  %vm251_vm0 = vcmask 261120  }
   0xc   : > { %270 = vmatpush.msra.mxu0 %v246_v0  ;;  %1129 = vmatpush.msra.mxu2 %v246_v0  ;;  %v243_v4 = vld [vmem:[%s1769_s2] sm:$0xff]  ;;  %s1127_s28 = sshll.u32 %s1782_s19, 4  ;;  %v1173_v17 = vmov 1   ;;  %v1174_v18 = vmov 0.0   ;;  %v1175_v61 = vmov 920167782   ;;  %s240_s17 = scalar_lea.vmem %s1772_s5, %s1782_s19 }
   0xd   : > { %1157 = vset.pattern.permute.xlu1 %v1172_v3  ;;  %1156 = vset.pattern.permute.xlu0 %v1172_v3  ;;  %s232_s6 = scalar_lea.vmem %s1767_s0, %s1127_s28  ;;  %s237_s9 = scalar_lea.vmem %s1768_s1, %s1127_s28  ;;  %v593_v21 = vld [vmem:[%s1771_s4] sm:$0xf]  ;;  %v1176_v0 = vmov 2131351028  }
   0xe   : > { %271 = vmatpush.msra.mxu0 %v245_v1  ;;  %1130 = vmatpush.msra.mxu2 %v245_v1  ;;  %v241_v5 = vld [vmem:[%s237_s9] sm:$0xff]  ;;  %v242_v7 = vld [vmem:[%s237_s9 + $0x8] sm:$0xff]  ;;  %v606_v24 = vperm.slane %v593_v21, 0  ;;  %v621_v26 = vperm.slane %v593_v21, 1  ;;  %v636_v28 = vperm.slane %v593_v21, 2  ;;  %v651_v29 = vperm.slane %v593_v21, 3 }
   0xf   : > { %1158 = vset.pattern.permute.xlu2 %v1172_v3  ;;  %v591_v6 = vld [vmem:[%s232_s6] sm:$0xff]  ;;  %v592_v8 = vld [vmem:[%s232_s6 + $0x8] sm:$0xff] }
  0x10   : > { %272 = vmatpush.msra.mxu0 %v244_v2  ;;  %1131 = vmatpush.msra.mxu2 %v244_v2  ;;  %vm594_vm1 = vcmp.eq.s32.totalorder %v591_v6, 0  ;;  %vm625_vm2 = vcmp.eq.s32.totalorder %v592_v8, 2  ;;  %vm595_vm3 = vcmp.eq.s32.totalorder %v592_v8, 0  ;;  %vm640_vm4 = vcmp.eq.s32.totalorder %v592_v8, 3  ;;  %v1161_v36 = vld [vmem:[%s1770_s3] ss:$0 sm:$0xff] }
  0x11   : > { %v627_v9 = vsel %vm625_vm2, 1, %v1172_v3  ;;  %v597_v10 = vsel %vm595_vm3, 1, %v1172_v3  ;;  %v596_v11 = vsel %vm594_vm1, 1, %v1172_v3  ;;  %vm610_vm5 = vcmp.eq.s32.totalorder %v592_v8, 1 }
  0x12   : > { %273 = vmatpush.msra.mxu0 %v243_v4  ;;  %1132 = vmatpush.msra.mxu2 %v243_v4  ;;  %vm609_vm6 = vcmp.eq.s32.totalorder %v591_v6, 1  ;;  %v642_v12 = vsel %vm640_vm4, 1, %v1172_v3  ;;  %v612_v13 = vsel %vm610_vm5, 1, %v1172_v3  ;;  %vm639_vm7 = vcmp.eq.s32.totalorder %v591_v6, 3 }
  0x13   : > { %1107 = vmatmul.msk.f32.vlgmr.msra.gmra.mxu0 %vm251_vm0, %v241_v5  ;;  %1108 = vmatmul.msk.f32.vlgmr.msra.gmra.mxu2 %vm251_vm0, %v242_v7  ;;  %v611_v14 = vsel %vm609_vm6, 1, %v1172_v3  ;;  %vm624_vm8 = vcmp.eq.s32.totalorder %v591_v6, 2  ;;  %v641_v15 = vsel %vm639_vm7, 1, %v1172_v3  ;;  %v1115_v19 = vsel %vm609_vm6, 1.0, %v1174_v18 }
  0x14   : > { %632 = vperm.xlu1 %1157, %v627_v9   ;;  %602 = vperm.xlu0 %1156, %v597_v10   ;;  %v626_v16 = vsel %vm624_vm8, 1, %v1172_v3  ;;  %v1116_v23 = vsel %vm610_vm5, 1.0, %v1174_v18  ;;  %v1177_v2 = vmov 2102212464   ;;  %v1178_v6 = vmov 1326507024  }
  0x15   : > { %599 = vperm.xlu2 %1158, %v596_v11   ;;  %v1179_v8 = vmov 2475754826  }
  0x1c   : > { %647 = vperm.xlu1 %1157, %v642_v12   ;;  %617 = vperm.xlu0 %1156, %v612_v13  }
  0x1d   : > { %614 = vperm.xlu2 %1158, %v611_v14  }
  0x24   : > { %644 = vperm.xlu1 %1157, %v641_v15   ;;  %629 = vperm.xlu0 %1156, %v626_v16   ;;  %v1180_v16 = vmov 683565275  }
  0x25   : > { %1159 = vset.pattern.permute.xlu2 %v1173_v17 }
  0x26   : > { %973 = vperm.xlu2 %1159, %v1116_v23  }
  0x2c   : > { %1160 = vset.pattern.permute.xlu0 %v1173_v17 }
  0x2d   : > { %968 = vperm.xlu0 %1160, %v1115_v19  }
  0x6f   : > { %v600_v25 = vpop.permute.xlu2 %599 }
  0x70   : > { %vm604_vm13 = vcmp.eq.s32.totalorder %v600_v25, 1 }
  0x71   : > { %v607_v42 = vsel %vm604_vm13, %v606_v24, 0.0 }
  0x77   : > { %v615_v37 = vpop.permute.xlu2 %614 }
  0x78   : > { %vm619_vm14 = vcmp.eq.s32.totalorder %v615_v37, 1 }
  0x79   : > { %v622_v48 = vsel %vm619_vm14, %v621_v26, %v607_v42 }
  0x86   : > { %v633_v20 = vpop.permute.xlu1 %632  ;;  %v603_v22 = vpop.permute.xlu0 %602 }
  0x87   : > { %vm605_vm9 = vcmp.eq.s32.totalorder %v603_v22, 1  ;;  %vm635_vm11 = vcmp.eq.s32.totalorder %v633_v20, 1 }
  0x88   : > { %v608_v27 = vsel %vm605_vm9, %v606_v24, 0.0 }
  0x8e   : > { %v648_v30 = vpop.permute.xlu1 %647  ;;  %v618_v31 = vpop.permute.xlu0 %617 }
  0x8f   : > { %vm620_vm10 = vcmp.eq.s32.totalorder %v618_v31, 1  ;;  %vm650_vm12 = vcmp.eq.s32.totalorder %v648_v30, 1 }
  0x90   : > { %v623_v32 = vsel %vm620_vm10, %v621_v26, %v608_v27  ;;  %v275_v51 = vpop.f32.mrf.mxu0 }
  0x91   : > { %v638_v33 = vsel %vm635_vm11, %v636_v28, %v623_v32  ;;  %v1272_v57 = vadd.f32 %v1161_v36, %v275_v51 }
  0x92   : > { %v1258_v34 = vsel %vm650_vm12, %v651_v29, %v638_v33 }
  0x93   : > { %v813_v35 = vand.u32 2139095040, %v1258_v34  ;;  %v810_v46 = vand.u32 2147483647, %v1258_v34  ;;  %v284_v10 = vand.u32 2139095040, %v1272_v57 }
  0x95   : > { %v814_v38 = vshrl.u32 %v813_v35, 23  ;;  %v817_v53 = vand.u32 8388607, %v810_v46  ;;  %v1304_v33 = vshrl.u32 %v284_v10, 23 }
  0x96   : > { %v278_v39 = vpop.f32.mrf.mxu2  ;;  %v630_v41 = vpop.permute.xlu0 %629 }
  0x97   : > { %v1264_v40 = vadd.f32 %v1161_v36, %v278_v39  ;;  %v1120_v43 = vadd.s32 4294967169, %v814_v38  ;;  %v645_v45 = vpop.permute.xlu1 %644  ;;  %vm634_vm15 = vcmp.eq.s32.totalorder %v630_v41, 1  ;;  %v818_v59 = vor.u32 8388608, %v817_v53 }
  0x98   : > { %vm649_vm1 = vcmp.eq.s32.totalorder %v645_v45, 1  ;;  %v637_v49 = vsel %vm634_vm15, %v636_v28, %v622_v48 }
  0x99   : > { %v438_v44 = vand.u32 2139095040, %v1264_v40  ;;  %v820_v47 = vadd.s32 1, %v1120_v43  ;;  %v1270_v55 = vsel %vm649_vm1, %v651_v29, %v637_v49  ;;  %v1289_v19 = vshll.u32 %v818_v59, 8 }
  0x9a   : > { %v659_v63 = vand.u32 2139095040, %v1270_v55  ;;  %v656_v11 = vand.u32 2147483647, %v1270_v55  ;;  %v435_v35 = vand.u32 2147483647, %v1264_v40 }
  0x9b   : > { %vm821_vm0 = vcmp.gt.s32.totalorder %v820_v47, 0  ;;  %v439_v52 = vshrl.u32 %v438_v44, 23  ;;  %v1310_v37 = vand.u32 65535, %v1289_v19  ;;  %v1322_v44 = vshrl.u32 %v1289_v19, 16 }
  0x9c   : > { %v822_v50 = vsel %vm821_vm0, %v820_v47, 0  ;;  %v660_v20 = vshrl.u32 %v659_v63, 23  ;;  %v663_v26 = vand.u32 8388607, %v656_v11 }
  0x9d   : > { %v824_v54 = vand.u32 31, %v822_v50  ;;  %v1112_v58 = vadd.s32 4294967169, %v439_v52  ;;  %v1274_v60 = vshrl.u32 %v822_v50, 5 }
  0x9e   : > { %v1117_v25 = vadd.s32 4294967169, %v660_v20  ;;  %v664_v38 = vor.u32 8388608, %v663_v26 }
  0x9f   : > { %v825_v56 = vsub.s32 32, %v824_v54  ;;  %v839_v62 = vshll.u32 %v1175_v61, %v824_v54  ;;  %v830_v9 = vshll.u32 %v1179_v8, %v824_v54  ;;  %v833_v12 = vshll.u32 %v1176_v0, %v824_v54 }
  0xa0   : > { %v836_v13 = vshll.u32 %v1177_v2, %v824_v54  ;;  %v445_v15 = vadd.s32 1, %v1112_v58  ;;  %v827_v17 = vshll.u32 %v1180_v16, %v824_v54  ;;  %vm845_vm2 = vcmp.lt.s32.totalorder %v1274_v60, 4 }
  0xa1   : > { %v831_v1 = vshrl.u32 %v1176_v0, %v825_v56  ;;  %v834_v4 = vshrl.u32 %v1177_v2, %v825_v56  ;;  %v837_v5 = vshrl.u32 %v1175_v61, %v825_v56  ;;  %v840_v7 = vshrl.u32 %v1178_v6, %v825_v56 }
  0xa2   : > { %v828_v18 = vshrl.u32 %v1179_v8, %v825_v56  ;;  %vm446_vm3 = vcmp.gt.s32.totalorder %v445_v15, 0  ;;  %vm842_vm4 = vcmp.lt.s32.totalorder %v1274_v60, 1  ;;  %vm844_vm5 = vcmp.lt.s32.totalorder %v1274_v60, 3 }
  0xa3   : > { %v841_v14 = vor.u32 %v840_v7, %v839_v62  ;;  %v832_v21 = vor.u32 %v831_v1, %v830_v9  ;;  %v835_v22 = vor.u32 %v834_v4, %v833_v12  ;;  %v838_v23 = vor.u32 %v837_v5, %v836_v13 }
  0xa4   : > { %v447_v27 = vsel %vm446_vm3, %v445_v15, 0  ;;  %v829_v28 = vor.u32 %v828_v18, %v827_v17  ;;  %v666_v30 = vadd.s32 1, %v1117_v25  ;;  %v826_v39 = vshrl.u32 %v1180_v16, %v825_v56 }
  0xa5   : > { %v855_v24 = vsel %vm845_vm2, %v841_v14, 1326507024  ;;  %v1298_v29 = vand.u32 31, %v447_v27  ;;  %v854_v31 = vsel %vm842_vm4, %v832_v21, %v835_v22  ;;  %v851_v36 = vsel %vm845_vm2, %v838_v23, 920167782 }
  0xa6   : > { %v856_v32 = vsel %vm844_vm5, %v838_v23, %v855_v24  ;;  %vm667_vm6 = vcmp.gt.s32.totalorder %v666_v30, 0  ;;  %vm843_vm7 = vcmp.lt.s32.totalorder %v1274_v60, 2  ;;  %v847_v42 = vsel %vm845_vm2, %v835_v22, 2102212464 }
  0xa7   : > { %v1314_v41 = vsub.s32 32, %v1298_v29  ;;  %v850_v43 = vsel %vm842_vm4, %v829_v28, %v832_v21  ;;  %v668_v45 = vsel %vm667_vm6, %v666_v30, 0  ;;  %v1326_v47 = vsel %vm843_vm7, %v854_v31, %v856_v32 }
  0xa8   : > { %v852_v48 = vsel %vm844_vm5, %v835_v22, %v851_v36  ;;  %v1330_v49 = vshrl.u32 %v447_v27, 5  ;;  %v670_v50 = vand.u32 31, %v668_v45  ;;  %v1334_v51 = vsel %vm842_vm4, %v826_v39, %v829_v28 }
  0xa9   : > { %v461_v52 = vshll.u32 %v1177_v2, %v1298_v29  ;;  %v1340_v53 = vshll.u32 %v1175_v61, %v1298_v29  ;;  %v1342_v54 = vshll.u32 %v664_v38, 8  ;;  %v1346_v56 = vsel %vm844_vm5, %v832_v21, %v847_v42 }
  0xaa   : > { %v462_v58 = vshrl.u32 %v1175_v61, %v1314_v41  ;;  %v671_v59 = vsub.s32 32, %v670_v50  ;;  %v861_v62 = vand.u32 65535, %v1326_v47  ;;  %v862_v63 = vshrl.u32 %v1326_v47, 16 }
  0xab   : > { %v1354_v1 = vshrl.u32 %v1178_v6, %v1314_v41  ;;  %v1356_v4 = vshrl.u32 %v668_v45, 5  ;;  %v673_v5 = vshll.u32 %v1180_v16, %v670_v50  ;;  %v676_v7 = vshll.u32 %v1179_v8, %v670_v50 }
  0xac   : > { %v674_v9 = vshrl.u32 %v1179_v8, %v671_v59  ;;  %v677_v10 = vshrl.u32 %v1176_v0, %v671_v59  ;;  %v679_v12 = vshll.u32 %v1176_v0, %v670_v50  ;;  %v680_v13 = vshrl.u32 %v1177_v2, %v671_v59 }
  0xad   : > { %v682_v14 = vshll.u32 %v1177_v2, %v670_v50  ;;  %v683_v15 = vshrl.u32 %v1175_v61, %v671_v59  ;;  %v685_v17 = vshll.u32 %v1175_v61, %v670_v50  ;;  %v686_v18 = vshrl.u32 %v1178_v6, %v671_v59 }
  0xae   : > { %v675_v20 = vor.u32 %v674_v9, %v673_v5  ;;  %v1368_v21 = vor.u32 %v677_v10, %v676_v7  ;;  %v681_v22 = vor.u32 %v680_v13, %v679_v12  ;;  %v1371_v23 = vmul.u32 %v862_v63, %v1310_v37 }
  0xaf   : > { %v684_v24 = vor.u32 %v683_v15, %v682_v14  ;;  %v687_v25 = vor.u32 %v686_v18, %v685_v17  ;;  %vm688_vm8 = vcmp.lt.s32.totalorder %v1356_v4, 1  ;;  %v705_v26 = vand.u32 65535, %v1342_v54 }
  0xb0   : > { %vm691_vm9 = vcmp.lt.s32.totalorder %v1356_v4, 4  ;;  %v696_v27 = vsel %vm688_vm8, %v675_v20, %v1368_v21  ;;  %v700_v28 = vsel %vm688_vm8, %v1368_v21, %v681_v22  ;;  %v706_v30 = vshrl.u32 %v1342_v54, 16 }
  0xb1   : > { %vm690_vm10 = vcmp.lt.s32.totalorder %v1356_v4, 3  ;;  %v697_v31 = vsel %vm691_vm9, %v684_v24, 920167782  ;;  %v701_v32 = vsel %vm691_vm9, %v687_v25, 1326507024  ;;  %v863_v36 = vmul.u32 %v861_v62, %v1310_v37 }
  0xb2   : > { %vm689_vm11 = vcmp.lt.s32.totalorder %v1356_v4, 2  ;;  %v698_v38 = vsel %vm690_vm10, %v681_v22, %v697_v31  ;;  %v702_v39 = vsel %vm690_vm10, %v684_v24, %v701_v32  ;;  %v867_v42 = vshll.u32 %v1371_v23, 16 }
  0xb3   : > { %v672_v45 = vshrl.u32 %v1180_v16, %v671_v59  ;;  %v699_v47 = vsel %vm689_vm11, %v696_v27, %v698_v38  ;;  %v703_v50 = vsel %vm689_vm11, %v700_v28, %v702_v39  ;;  %v1401_v5 = vmul.u32 %v861_v62, %v1322_v44 }
  0xb4   : > { %v707_v7 = vand.u32 65535, %v703_v50  ;;  %v708_v9 = vshrl.u32 %v703_v50, 16  ;;  %v729_v10 = vand.u32 65535, %v699_v47  ;;  %v730_v12 = vshrl.u32 %v699_v47, 16 }
  0xb5   : > { %v1403_v13 = vor.u32 %v462_v58, %v461_v52  ;;  %v466_v14 = vor.u32 %v1354_v1, %v1340_v53  ;;  %v692_v59 = vsel %vm688_vm8, %v672_v45, %v675_v20  ;;  %v853_v15 = vsel %vm843_vm7, %v850_v43, %v852_v48 }
  0xb6   : > { %v693_v17 = vsel %vm691_vm9, %v681_v22, 2102212464  ;;  %v710_v62 = vmul.u32 %v708_v9, %v705_v26  ;;  %v711_v18 = vmul.u32 %v707_v7, %v706_v30  ;;  %v873_v24 = vadd.s32 %v867_v42, %v863_v36 }
  0xb7   : > { %vm470_vm12 = vcmp.lt.s32.totalorder %v1330_v49, 4  ;;  %v732_v25 = vmul.u32 %v730_v12, %v705_v26  ;;  %v733_v52 = vmul.u32 %v729_v10, %v706_v30  ;;  %v866_v58 = vmul.u32 %v862_v63, %v1322_v44 }
  0xb8   : > { %vm871_vm13 = vc.u32 %v863_v36, %v867_v42  ;;  %v709_v53 = vmul.u32 %v707_v7, %v705_v26  ;;  %v712_v1 = vmul.u32 %v708_v9, %v706_v30  ;;  %v713_v27 = vshll.u32 %v710_v62, 16 }
  0xb9   : > { %v869_v20 = vshll.u32 %v1401_v5, 16  ;;  %v715_v28 = vshll.u32 %v711_v18, 16  ;;  %v731_v43 = vmul.u32 %v729_v10, %v705_v26  ;;  %v734_v48 = vmul.u32 %v730_v12, %v706_v30 }
  0xba   : > { %v735_v31 = vshll.u32 %v732_v25, 16  ;;  %vm717_vm14 = vc.u32 %v709_v53, %v713_v27  ;;  %v719_v22 = vadd.s32 %v713_v27, %v709_v53  ;;  %v872_v32 = vsel %vm871_vm13, 1, %v1172_v3 }
  0xbb   : > { %vm875_vm15 = vc.u32 %v873_v24, %v869_v20  ;;  %v718_v38 = vsel %vm717_vm14, 1, %v1172_v3  ;;  %v737_v39 = vshll.u32 %v733_v52, 16  ;;  %v874_v45 = vadd.s32 %v872_v32, %v866_v58 }
  0xbc   : > { %vm739_vm0 = vc.u32 %v731_v43, %v735_v31  ;;  %v741_v63 = vadd.s32 %v735_v31, %v731_v43  ;;  %v720_v36 = vadd.s32 %v718_v38, %v712_v1  ;;  %vm721_vm1 = vc.u32 %v719_v22, %v715_v28 }
  0xbd   : > { %v740_v42 = vsel %vm739_vm0, 1, %v1172_v3  ;;  %v722_v47 = vsel %vm721_vm1, 1, %v1172_v3  ;;  %v876_v30 = vsel %vm875_vm15, 1, %v1172_v3  ;;  %v714_v50 = vshrl.u32 %v710_v62, 16 }
  0xbe   : > { %v742_v26 = vadd.s32 %v740_v42, %v734_v48  ;;  %vm743_vm2 = vc.u32 %v741_v63, %v737_v39  ;;  %v724_v7 = vadd.s32 %v722_v47, %v720_v36  ;;  %v883_v10 = vand.u32 65535, %v853_v15 }
  0xbf   : > { %v744_v9 = vsel %vm743_vm2, 1, %v1172_v3  ;;  %v694_v12 = vsel %vm690_vm10, %v1368_v21, %v693_v17  ;;  %v736_v24 = vshrl.u32 %v732_v25, 16  ;;  %v884_v1 = vshrl.u32 %v853_v15, 16 }
  0xc0   : > { %v746_v53 = vadd.s32 %v744_v9, %v742_v26  ;;  %v476_v58 = vsel %vm470_vm12, %v1403_v13, 920167782  ;;  %v725_v27 = vadd.s32 %v724_v7, %v714_v50  ;;  %v878_v20 = vadd.s32 %v876_v30, %v874_v45 }
  0xc1   : > { %v887_v28 = vmul.u32 %v883_v10, %v1322_v44  ;;  %v716_v62 = vshrl.u32 %v711_v18, 16  ;;  %v738_v43 = vshrl.u32 %v733_v52, 16  ;;  %v886_v31 = vmul.u32 %v884_v1, %v1310_v37 }
  0xc2   : > { %v747_v48 = vadd.s32 %v746_v53, %v736_v24  ;;  %v480_v22 = vsel %vm470_vm12, %v466_v14, 1326507024  ;;  %v695_v21 = vsel %vm689_vm11, %v692_v59, %v694_v12  ;;  %v1434_v15 = vadd.s32 %v741_v63, %v737_v39 }
  0xc3   : > { %v868_v17 = vshrl.u32 %v1371_v23, 16  ;;  %v1437_v25 = vadd.s32 %v725_v27, %v716_v62  ;;  %v885_v38 = vmul.u32 %v883_v10, %v1310_v37  ;;  %v889_v18 = vshll.u32 %v886_v31, 16 }
  0xc4   : > { %v748_v32 = vadd.s32 %v747_v48, %v738_v43  ;;  %v888_v36 = vmul.u32 %v884_v1, %v1322_v44  ;;  %v891_v42 = vshll.u32 %v887_v28, 16  ;;  %v442_v14 = vand.u32 8388607, %v435_v35 }
  0xc5   : > { %v879_v52 = vadd.s32 %v878_v20, %v868_v17  ;;  %vm893_vm3 = vc.u32 %v885_v38, %v889_v18  ;;  %v895_v4 = vadd.s32 %v889_v18, %v885_v38  ;;  %v452_v59 = vshll.u32 %v1180_v16, %v1298_v29 }
  0xc6   : > { %v752_v45 = vadd.s32 1, %v748_v32  ;;  %v894_v23 = vsel %vm893_vm3, 1, %v1172_v3  ;;  %v453_v39 = vshrl.u32 %v1179_v8, %v1314_v41  ;;  %v455_v37 = vshll.u32 %v1179_v8, %v1298_v29 }
  0xc7   : > { %v456_v44 = vshrl.u32 %v1176_v0, %v1314_v41  ;;  %vm751_vm4 = vc.u32 %v1437_v25, %v1434_v15  ;;  %v870_v63 = vshrl.u32 %v1401_v5, 16  ;;  %v896_v47 = vadd.s32 %v894_v23, %v888_v36 }
  0xc8   : > { %vm897_vm5 = vc.u32 %v895_v4, %v891_v42  ;;  %v443_v30 = vor.u32 8388608, %v442_v14  ;;  %v1456_v50 = vor.u32 %v453_v39, %v452_v59  ;;  %v749_v9 = vmul.u32 %v1342_v54, %v695_v21 }
  0xc9   : > { %v898_v26 = vsel %vm897_vm5, 1, %v1172_v3  ;;  %v1458_v7 = vor.u32 %v456_v44, %v455_v37  ;;  %v1461_v10 = vadd.s32 %v879_v52, %v870_v63  ;;  %v890_v12 = vshrl.u32 %v886_v31, 16 }
  0xca   : > { %v900_v24 = vadd.s32 %v898_v26, %v896_v47  ;;  %v753_v53 = vsel %vm751_vm4, %v752_v45, %v748_v32  ;;  %v892_v1 = vshrl.u32 %v887_v28, 16  ;;  %v458_v5 = vshll.u32 %v1176_v0, %v1298_v29 }
  0xcb   : > { %v459_v27 = vshrl.u32 %v1177_v2, %v1314_v41  ;;  %v1467_v20 = vadd.s32 %v895_v4, %v891_v42  ;;  %vm467_vm6 = vcmp.lt.s32.totalorder %v1330_v49, 1  ;;  %vm469_vm8 = vcmp.lt.s32.totalorder %v1330_v49, 3 }
  0xcc   : > { %v901_v62 = vadd.s32 %v900_v24, %v890_v12  ;;  %v475_v43 = vsel %vm467_vm6, %v1456_v50, %v1458_v7  ;;  %v481_v29 = vsel %vm469_vm8, %v1403_v13, %v480_v22  ;;  %v1478_v28 = vshll.u32 %v443_v30, 8 }
  0xcd   : > { %v460_v54 = vor.u32 %v459_v27, %v458_v5  ;;  %v1109_v48 = vadd.s32 4294967169, %v1304_v33  ;;  %v754_v31 = vadd.s32 %v753_v53, %v749_v9  ;;  %v849_v21 = vsel %vm843_vm7, %v1334_v51, %v1346_v56 }
  0xce   : > { %v902_v17 = vadd.s32 %v901_v62, %v892_v1  ;;  %vm905_vm9 = vc.u32 %v1461_v10, %v1467_v20  ;;  %vm468_vm10 = vcmp.lt.s32.totalorder %v1330_v49, 2  ;;  %v903_v51 = vmul.u32 %v1289_v19, %v849_v21 }
  0xcf   : > { %v477_v32 = vsel %vm469_vm8, %v460_v54, %v476_v58  ;;  %v479_v13 = vsel %vm467_vm6, %v1458_v7, %v460_v54  ;;  %v484_v56 = vand.u32 65535, %v1478_v28  ;;  %v485_v18 = vshrl.u32 %v1478_v28, 16 }
  0xd0   : > { %v906_v33 = vadd.s32 1, %v902_v17  ;;  %v478_v22 = vsel %vm468_vm10, %v475_v43, %v477_v32  ;;  %v482_v60 = vsel %vm468_vm10, %v479_v13, %v481_v29  ;;  %v291_v36 = vadd.s32 1, %v1109_v48 }
  0xd1   : > { %v486_v52 = vand.u32 65535, %v482_v60  ;;  %v487_v58 = vshrl.u32 %v482_v60, 16  ;;  %v755_v42 = vadd.s32 536870912, %v754_v31  ;;  %v509_v14 = vshrl.u32 %v478_v22, 16 }
  0xd2   : > { %v907_v38 = vsel %vm905_vm9, %v906_v33, %v902_v17  ;;  %vm292_vm7 = vcmp.gt.s32.totalorder %v291_v36, 0  ;;  %v508_v63 = vand.u32 65535, %v478_v22 }
  0xd3   : > { %v908_v45 = vadd.s32 %v907_v38, %v903_v51  ;;  %v489_v4 = vmul.u32 %v487_v58, %v484_v56  ;;  %v490_v59 = vmul.u32 %v486_v52, %v485_v18  ;;  %v488_v23 = vmul.u32 %v486_v52, %v484_v56 }
  0xd4   : > { %v511_v37 = vmul.u32 %v509_v14, %v484_v56  ;;  %v1500_v44 = vshrl.u32 %v755_v42, 30  ;;  %v491_v19 = vmul.u32 %v487_v58, %v485_v18  ;;  %v293_v53 = vsel %vm292_vm7, %v291_v36, 0 }
  0xd5   : > { %v492_v39 = vshll.u32 %v489_v4, 16  ;;  %v909_v47 = vadd.s32 536870912, %v908_v45  ;;  %v494_v26 = vshll.u32 %v490_v59, 16  ;;  %v510_v62 = vmul.u32 %v508_v63, %v484_v56 }
  0xd6   : > { %v514_v24 = vshll.u32 %v511_v37, 16  ;;  %v757_v1 = vshll.u32 %v1500_v44, 30  ;;  %v512_v43 = vmul.u32 %v508_v63, %v485_v18  ;;  %v1507_v29 = vand.u32 31, %v293_v53 }
  0xd7   : > { %vm496_vm11 = vc.u32 %v488_v23, %v492_v39  ;;  %v498_v30 = vadd.s32 %v492_v39, %v488_v23  ;;  %v1505_v27 = vshrl.u32 %v909_v47, 30  ;;  %v493_v32 = vshrl.u32 %v489_v4, 16 }
  0xd8   : > { %v497_v9 = vsel %vm496_vm11, 1, %v1172_v3  ;;  %vm518_vm14 = vc.u32 %v510_v62, %v514_v24  ;;  %v1509_v21 = vsub.s32 %v754_v31, %v757_v1  ;;  %v513_v13 = vmul.u32 %v509_v14, %v485_v18 }
  0xd9   : > { %v499_v12 = vadd.s32 %v497_v9, %v491_v19  ;;  %vm500_vm13 = vc.u32 %v498_v30, %v494_v26  ;;  %v911_v17 = vshll.u32 %v1505_v27, 30  ;;  %v516_v33 = vshll.u32 %v512_v43, 16 }
  0xda   : > { %v501_v5 = vsel %vm500_vm13, 1, %v1172_v3  ;;  %v519_v22 = vsel %vm518_vm14, 1, %v1172_v3  ;;  %v520_v60 = vadd.s32 %v514_v24, %v510_v62  ;;  %v1514_v51 = vsub.s32 32, %v1507_v29 }
  0xdb   : > { %v503_v48 = vadd.s32 %v501_v5, %v499_v12  ;;  %v451_v56 = vshrl.u32 %v1180_v16, %v1314_v41  ;;  %v760_v52 = vsub.s32 0, %v1509_v21  ;;  %v472_v31 = vsel %vm470_vm12, %v460_v54, 2102212464 }
  0xdc   : > { %v521_v58 = vadd.s32 %v519_v22, %v513_v13  ;;  %vm522_vm15 = vc.u32 %v520_v60, %v516_v33  ;;  %vm759_vm0 = vcmp.lt.s32.totalorder %v1509_v21, 0  ;;  %v1522_v18 = vsub.s32 %v908_v45, %v911_v17 }
  0xdd   : > { %v504_v38 = vadd.s32 %v503_v48, %v493_v32  ;;  %v495_v36 = vshrl.u32 %v490_v59, 16  ;;  %v523_v42 = vsel %vm522_vm15, 1, %v1172_v3  ;;  %v1525_v14 = vshrl.u32 %v293_v53, 5 }
  0xde   : > { %v310_v41 = vshll.u32 %v1175_v61, %v1507_v29  ;;  %v515_v4 = vshrl.u32 %v511_v37, 16  ;;  %v525_v23 = vadd.s32 %v523_v42, %v521_v58  ;;  %v311_v39 = vshrl.u32 %v1178_v6, %v1514_v51 }
  0xdf   : > { %v471_v54 = vsel %vm467_vm6, %v451_v56, %v1456_v50  ;;  %v473_v45 = vsel %vm469_vm8, %v1458_v7, %v472_v31  ;;  %v1537_v59 = vadd.s32 %v504_v38, %v495_v36  ;;  %v761_v19 = vsel %vm759_vm0, %v760_v52, %v1509_v21 }
  0xe0   : > { %v517_v63 = vshrl.u32 %v512_v43, 16  ;;  %v526_v47 = vadd.s32 %v525_v23, %v515_v4  ;;  %v281_v37 = vand.u32 2147483647, %v1272_v57  ;;  %v307_v26 = vshll.u32 %v1177_v2, %v1507_v29 }
  0xe1   : > { %v308_v6 = vshrl.u32 %v1175_v61, %v1514_v51  ;;  %v914_v50 = vsub.s32 0, %v1522_v18  ;;  %v1546_v30 = vadd.s32 %v520_v60, %v516_v33  ;;  %vm913_vm12 = vcmp.lt.s32.totalorder %v1522_v18, 0 }
  0xe2   : > { %v474_v7 = vsel %vm468_vm10, %v471_v54, %v473_v45  ;;  %v527_v9 = vadd.s32 %v526_v47, %v517_v63  ;;  %v312_v12 = vor.u32 %v311_v39, %v310_v41  ;;  %v762_v24 = vclz %v761_v19 }
  0xe3   : > { %vm530_vm1 = vc.u32 %v1537_v59, %v1546_v30  ;;  %vm316_vm2 = vcmp.lt.s32.totalorder %v1525_v14, 4  ;;  %v288_v61 = vand.u32 8388607, %v281_v37  ;;  %v309_v1 = vor.u32 %v308_v6, %v307_v26 }
  0xe4   : > { %v531_v53 = vadd.s32 1, %v527_v9  ;;  %v915_v5 = vsel %vm913_vm12, %v914_v50, %v1522_v18  ;;  %v528_v62 = vmul.u32 %v1478_v28, %v474_v7  ;;  %v301_v49 = vshll.u32 %v1179_v8, %v1507_v29 }
  0xe5   : > { %v302_v48 = vshrl.u32 %v1176_v0, %v1514_v51  ;;  %v304_v17 = vshll.u32 %v1176_v0, %v1507_v29  ;;  %v326_v32 = vsel %vm316_vm2, %v312_v12, 1326507024  ;;  %v1118_v13 = vadd.s32 4294967294, %v762_v24 }
  0xe6   : > { %v532_v43 = vsel %vm530_vm1, %v531_v53, %v527_v9  ;;  %v305_v22 = vshrl.u32 %v1177_v2, %v1514_v51  ;;  %v916_v60 = vclz %v915_v5  ;;  %v289_v28 = vor.u32 8388608, %v288_v61 }
  0xe7   : > { %v533_v33 = vadd.s32 %v532_v43, %v528_v62  ;;  %v1568_v56 = vor.u32 %v302_v48, %v301_v49  ;;  %vm315_vm3 = vcmp.lt.s32.totalorder %v1525_v14, 3  ;;  %vm313_vm4 = vcmp.lt.s32.totalorder %v1525_v14, 1 }
  0xe8   : > { %v1571_v52 = vor.u32 %v305_v22, %v304_v17  ;;  %vm1119_vm5 = vcmp.lt.s32.totalorder %v1118_v13, 0  ;;  %vm314_vm6 = vcmp.lt.s32.totalorder %v1525_v14, 2  ;;  %v327_v31 = vsel %vm315_vm3, %v309_v1, %v326_v32 }
  0xe9   : > { %v534_v38 = vadd.s32 536870912, %v533_v33  ;;  %v1121_v2 = vadd.s32 4294967294, %v916_v60  ;;  %v1583_v36 = vshll.u32 %v289_v28, 8  ;;  %v298_v41 = vshll.u32 %v1180_v16, %v1507_v29 }
  0xea   : > { %v325_v58 = vsel %vm313_vm4, %v1568_v56, %v1571_v52  ;;  %v299_v4 = vshrl.u32 %v1179_v8, %v1514_v51  ;;  %v765_v23 = vsel %vm1119_vm5, 0, %v1118_v13  ;;  %v322_v29 = vsel %vm316_vm2, %v309_v1, 920167782 }
  0xeb   : > { %v1574_v0 = vshrl.u32 %v534_v38, 30  ;;  %v328_v39 = vsel %vm314_vm6, %v325_v58, %v327_v31  ;;  %vm1122_vm8 = vcmp.lt.s32.totalorder %v1121_v2, 0  ;;  %v1593_v45 = vand.u32 65535, %v1583_v36 }
  0xec   : > { %v333_v19 = vshrl.u32 %v328_v39, 16  ;;  %v770_v63 = vsub.s32 4294967266, %v765_v23  ;;  %v1595_v26 = vor.u32 %v299_v4, %v298_v41  ;;  %v332_v6 = vand.u32 65535, %v328_v39 }
  0xed   : > { %v536_v42 = vshll.u32 %v1574_v0, 30  ;;  %v919_v50 = vsel %vm1122_vm8, 0, %v1121_v2  ;;  %v766_v9 = vsub.s32 32, %v765_v23  ;;  %v323_v61 = vsel %vm315_vm3, %v1571_v52, %v322_v29 }
  0xee   : > { %v1600_v8 = vmul.u32 %v333_v19, %v1593_v45  ;;  %v771_v24 = vadd.s32 127, %v770_v63  ;;  %v321_v53 = vsel %vm313_vm4, %v1595_v26, %v1568_v56  ;;  %v331_v1 = vshrl.u32 %v1583_v36, 16 }
  0xef   : > { %v537_v54 = vsub.s32 %v533_v33, %v536_v42  ;;  %v924_v5 = vsub.s32 4294967266, %v919_v50  ;;  %v334_v43 = vmul.u32 %v332_v6, %v1593_v45  ;;  %v750_v48 = vadd.s32 %v1434_v15, %v1437_v25 }
  0xf0   : > { %v338_v49 = vshll.u32 %v1600_v8, 16  ;;  %v1614_v17 = vmul.u32 %v332_v6, %v331_v1  ;;  %v324_v32 = vsel %vm314_vm6, %v321_v53, %v323_v61  ;;  %v772_v33 = vshll.u32 %v771_v24, 23 }
  0xf1   : > { %vm538_vm9 = vcmp.lt.s32.totalorder %v537_v54, 0  ;;  %v539_v47 = vsub.s32 0, %v537_v54  ;;  %v768_v13 = vshrl.u32 %v750_v48, %v766_v9  ;;  %v529_v22 = vadd.s32 %v1546_v30, %v1537_v59 }
  0xf2   : > { %vm342_vm7 = vc.u32 %v334_v43, %v338_v49  ;;  %v920_v28 = vsub.s32 32, %v919_v50  ;;  %v925_v38 = vadd.s32 127, %v924_v5  ;;  %v337_v58 = vmul.u32 %v333_v19, %v331_v1 }
  0xf3   : > { %v540_v7 = vsel %vm538_vm9, %v539_v47, %v537_v54  ;;  %v340_v15 = vshll.u32 %v1614_v17, 16  ;;  %v343_v25 = vsel %vm342_vm7, 1, %v1172_v3  ;;  %v355_v42 = vshrl.u32 %v324_v32, 16 }
  0xf4   : > { %v541_v12 = vclz %v540_v7  ;;  %v344_v63 = vadd.s32 %v338_v49, %v334_v43  ;;  %v767_v47 = vshll.u32 %v1509_v21, %v765_v23  ;;  %v904_v59 = vadd.s32 %v1467_v20, %v1461_v10 }
  0xf5   : > { %v354_v30 = vand.u32 65535, %v324_v32  ;;  %v345_v7 = vadd.s32 %v343_v25, %v337_v58  ;;  %v926_v9 = vshll.u32 %v925_v38, 23  ;;  %v357_v24 = vmul.u32 %v355_v42, %v1593_v45 }
  0xf6   : > { %v1113_v62 = vadd.s32 4294967294, %v541_v12  ;;  %vm346_vm11 = vc.u32 %v344_v63, %v340_v15  ;;  %v769_v19 = vor.u32 %v768_v13, %v767_v47  ;;  %v922_v53 = vshrl.u32 %v904_v59, %v920_v28 }
  0xf7   : > { %v347_v12 = vsel %vm346_vm11, 1, %v1172_v3  ;;  %vm1629_vm13 = vcmp.le.f32.partialorder %v435_v35, 0.7853982  ;;  %vm437_vm14 = vcmp.lt.s32.totalorder %v1264_v40, 0  ;;  %v358_v10 = vmul.u32 %v354_v30, %v331_v1 }
  0xf8   : > { %vm1114_vm10 = vcmp.lt.s32.totalorder %v1113_v62, 0  ;;  %v921_v20 = vshll.u32 %v1522_v18, %v919_v50  ;;  %v776_v43 = vcvt.s32.f32 %v769_v19  ;;  %v927_v49 = vor.u32 4788187, %v926_v9 }
  0xf9   : > { %v544_v60 = vsel %vm1114_vm10, 0, %v1113_v62  ;;  %v349_v62 = vadd.s32 %v347_v12, %v345_v7  ;;  %v356_v48 = vmul.u32 %v354_v30, %v1593_v45  ;;  %v360_v32 = vshll.u32 %v357_v24, 16 }
  0xfa   : > { %v545_v31 = vsub.s32 32, %v544_v60  ;;  %v549_v2 = vsub.s32 4294967266, %v544_v60  ;;  %v546_v41 = vshll.u32 %v537_v54, %v544_v60  ;;  %v773_v54 = vor.u32 4788187, %v772_v33 }
  0xfb   : > { %v923_v33 = vor.u32 %v922_v53, %v921_v20  ;;  %v339_v35 = vshrl.u32 %v1600_v8, 16  ;;  %v359_v60 = vmul.u32 %v355_v42, %v331_v1  ;;  %v362_v28 = vshll.u32 %v358_v10, 16 }
  0xfc   : > { %v547_v4 = vshrl.u32 %v529_v22, %v545_v31  ;;  %v550_v39 = vadd.s32 127, %v549_v2  ;;  %v774_v13 = vand.u32 2147483647, %v773_v54  ;;  %vm364_vm15 = vc.u32 %v356_v48, %v360_v32 }
  0xfd   : > { %v366_v38 = vadd.s32 %v360_v32, %v356_v48  ;;  %v297_v18 = vshrl.u32 %v1180_v16, %v1514_v51  ;;  %v350_v50 = vadd.s32 %v349_v62, %v339_v35  ;;  %v365_v2 = vsel %vm364_vm15, 1, %v1172_v3 }
  0xfe   : > { %v548_v29 = vor.u32 %v547_v4, %v546_v41  ;;  %v551_v6 = vshll.u32 %v550_v39, 23  ;;  %v928_v58 = vand.u32 2147483647, %v927_v49  ;;  %v318_v45 = vsel %vm316_vm2, %v1571_v52, 2102212464 }
  0xff   : > { %v367_v15 = vadd.s32 %v365_v2, %v359_v60  ;;  %vm368_vm0 = vc.u32 %v366_v38, %v362_v28  ;;  %v777_v25 = vmul.f32 %v776_v43, %v774_v13  ;;  %v341_v1 = vshrl.u32 %v1614_v17, 16 }
 0x100   : > { %v552_v61 = vor.u32 4788187, %v551_v6  ;;  %v555_v5 = vcvt.s32.f32 %v548_v29  ;;  %v369_v42 = vsel %vm368_vm0, 1, %v1172_v3  ;;  %v930_v41 = vcvt.s32.f32 %v923_v33 }
 0x101   : > { %v361_v51 = vshrl.u32 %v357_v24, 16  ;;  %v371_v4 = vadd.s32 %v369_v42, %v367_v15  ;;  %v317_v52 = vsel %vm313_vm4, %v297_v18, %v1595_v26  ;;  %v319_v63 = vsel %vm315_vm3, %v1568_v56, %v318_v45 }
 0x102   : > { %v553_v23 = vand.u32 2147483647, %v552_v61  ;;  %v1656_v47 = vadd.s32 %v350_v50, %v341_v1  ;;  %v931_v17 = vmul.f32 %v930_v41, %v928_v58  ;;  %v363_v3 = vshrl.u32 %v358_v10, 16 }
 0x103   : > { %v372_v59 = vadd.s32 %v371_v4, %v361_v51  ;;  %v778_v30 = vxor.u32 2147483648, %v777_v25  ;;  %v1658_v7 = vadd.s32 %v366_v38, %v362_v28  ;;  %v559_v19 = vsub.s32 4, %v1574_v0 }
 0x104   : > { %v556_v22 = vmul.f32 %v555_v5, %v553_v23  ;;  %v320_v9 = vsel %vm314_vm6, %v317_v52, %v319_v63  ;;  %vm658_vm1 = vcmp.lt.s32.totalorder %v1270_v55, 0  ;;  %v932_v56 = vxor.u32 2147483648, %v931_v17 }
 0x105   : > { %v373_v26 = vadd.s32 %v372_v59, %v363_v3  ;;  %vm376_vm12 = vc.u32 %v1656_v47, %v1658_v7  ;;  %v779_v53 = vsel %vm658_vm1, %v778_v30, %v777_v25  ;;  %v374_v20 = vmul.u32 %v1583_v36, %v320_v9 }
 0x106   : > { %v557_v31 = vxor.u32 2147483648, %v556_v22  ;;  %vm812_vm2 = vcmp.lt.s32.totalorder %v1258_v34, 0  ;;  %v560_v14 = vsel %vm437_vm14, %v559_v19, %v1574_v0  ;;  %vm1675_vm3 = vcmp.le.f32.partialorder %v656_v11, 0.7853982 }
 0x107   : > { %v377_v54 = vadd.s32 1, %v373_v26  ;;  %v1682_v36 = vsel %vm1675_vm3, %v1270_v55, %v779_v53  ;;  %v933_v48 = vsel %vm812_vm2, %v932_v56, %v931_v17  ;;  %v562_v0 = vsel %vm1629_vm13, 0, %v560_v14 }
 0x108   : > { %v558_v8 = vsel %vm437_vm14, %v557_v31, %v556_v22  ;;  %vm1690_vm4 = vcmp.le.f32.partialorder %v810_v46, 0.7853982  ;;  %v1698_v28 = vmul.f32 %v1682_v36, %v1682_v36  ;;  %v579_v38 = vand.u32 3, %v562_v0 }
 0x109   : > { %v561_v16 = vsel %vm1629_vm13, %v1264_v40, %v558_v8  ;;  %v378_v23 = vsel %vm376_vm12, %v377_v54, %v373_v26  ;;  %v1703_v21 = vsel %vm1690_vm4, %v1258_v34, %v933_v48  ;;  %vm578_vm10 = vweird.f32 %v1264_v40 }
 0x10a   : > { %v563_v39 = vmul.f32 %v561_v16, %v561_v16  ;;  %v379_v49 = vadd.s32 %v378_v23, %v374_v20  ;;  %v1708_v50 = vmul.f32 %v1703_v21, %v1703_v21  ;;  %vm580_vm5 = vcmp.lt.s32.totalorder %v579_v38, 2 }
 0x10b   : > { %vm581_vm6 = vcmp.eq.s32.totalorder %v579_v38, 0  ;;  %vm584_vm8 = vcmp.eq.s32.totalorder %v579_v38, 2  ;;  %v792_v45 = vmul.f32 -0.00019511016, %v1698_v28  ;;  %v785_v17 = vmul.f32 -0.001358992, %v1698_v28 }
 0x10c   : > { %v564_v29 = vmul.f32 -0.001358992, %v563_v39  ;;  %v571_v6 = vmul.f32 -0.00019511016, %v563_v39  ;;  %v380_v11 = vadd.s32 536870912, %v379_v49  ;;  %v375_v30 = vadd.s32 %v1658_v7, %v1656_v47 }
 0x10d   : > { %v946_v42 = vmul.f32 -0.00019511016, %v1708_v50  ;;  %v939_v3 = vmul.f32 -0.001358992, %v1708_v50  ;;  %v786_v9 = vadd.f32 0.041655596, %v785_v17 }
 0x10e   : > { %v565_v12 = vadd.f32 0.041655596, %v564_v29  ;;  %v572_v24 = vadd.f32 0.008332121, %v571_v6  ;;  %v1694_v60 = vshrl.u32 %v380_v11, 30  ;;  %v780_v7 = vsub.s32 4, %v1500_v44 }
 0x10f   : > { %v947_v63 = vadd.f32 0.008332121, %v946_v42  ;;  %v940_v56 = vadd.f32 0.041655596, %v939_v3  ;;  %v787_v20 = vmul.f32 %v786_v9, %v1698_v28  ;;  %v934_v0 = vsub.s32 4, %v1505_v27 }
 0x110   : > { %v566_v61 = vmul.f32 %v565_v12, %v563_v39  ;;  %v573_v10 = vmul.f32 %v572_v24, %v563_v39  ;;  %v382_v46 = vshll.u32 %v1694_v60, 30  ;;  %vm283_vm11 = vcmp.lt.s32.totalorder %v1272_v57, 0 }
 0x111   : > { %v948_v19 = vmul.f32 %v947_v63, %v1708_v50  ;;  %v941_v23 = vmul.f32 %v940_v56, %v1708_v50  ;;  %v788_v48 = vadd.f32 -0.4999988, %v787_v20  ;;  %vm1735_vm13 = vcmp.le.f32.partialorder %v281_v37, 0.7853982 }
 0x112   : > { %v567_v62 = vadd.f32 -0.4999988, %v566_v61  ;;  %v574_v43 = vadd.f32 -0.16666654, %v573_v10  ;;  %v383_v58 = vsub.s32 %v379_v49, %v382_v46  ;;  %v405_v5 = vsub.s32 4, %v1694_v60 }
 0x113   : > { %v949_v10 = vadd.f32 -0.16666654, %v948_v19 }
 0x114   : > { %v568_v32 = vmul.f32 %v567_v62, %v563_v39  ;;  %v575_v13 = vmul.f32 %v574_v43, %v563_v39  ;;  %vm384_vm9 = vcmp.lt.s32.totalorder %v383_v58, 0  ;;  %v385_v8 = vsub.s32 0, %v383_v58 }
 0x115   : > { %v793_v39 = vadd.f32 0.008332121, %v792_v45  ;;  %v950_v49 = vmul.f32 %v949_v10, %v1708_v50 }
 0x116   : > { %v569_v22 = vadd.f32 1.0, %v568_v32  ;;  %v576_v35 = vadd.f32 1.0, %v575_v13  ;;  %v942_v13 = vadd.f32 -0.4999988, %v941_v23  ;;  %v969_v23 = vpop.permute.xlu0 %968 }
 0x117   : > { %v794_v59 = vmul.f32 %v793_v39, %v1698_v28  ;;  %v951_v38 = vadd.f32 1.0, %v950_v49 }
 0x118   : > { %v577_v31 = vmul.f32 %v576_v35, %v561_v16  ;;  %v585_v18 = vxor.u32 2147483648, %v569_v22  ;;  %v386_v16 = vsel %vm384_vm9, %v385_v8, %v383_v58  ;;  %vm424_vm9 = vweird.f32 %v1272_v57 }
 0x119   : > { %v387_v4 = vclz %v386_v16  ;;  %v795_v54 = vadd.f32 -0.16666654, %v794_v59 }
 0x11a   : > { %v582_v2 = vxor.u32 2147483648, %v577_v31  ;;  %v586_v25 = vsel %vm584_vm8, %v585_v18, %v577_v31  ;;  %v789_v31 = vmul.f32 %v788_v48, %v1698_v28  ;;  %v935_v18 = vsel %vm812_vm2, %v934_v0, %v1505_v27 }
 0x11b   : > { %v1110_v52 = vadd.s32 4294967294, %v387_v4  ;;  %v796_v47 = vmul.f32 %v795_v54, %v1698_v28  ;;  %v937_v37 = vsel %vm1690_vm4, 0, %v935_v18  ;;  %vm953_vm4 = vweird.f32 %v1258_v34 }
 0x11c   : > { %v583_v15 = vsel %vm581_vm6, %v569_v22, %v582_v2  ;;  %v781_v22 = vsel %vm658_vm1, %v780_v7, %v1500_v44  ;;  %v943_v44 = vmul.f32 %v942_v13, %v1708_v50  ;;  %v954_v16 = vand.u32 3, %v937_v37 }
 0x11d   : > { %v587_v1 = vsel %vm580_vm5, %v583_v15, %v586_v25  ;;  %vm1111_vm7 = vcmp.lt.s32.totalorder %v1110_v52, 0  ;;  %v797_v11 = vadd.f32 1.0, %v796_v47  ;;  %v783_v28 = vsel %vm1675_vm3, 0, %v781_v22 }
 0x11e   : > { %v588_v41 = vsel %vm578_vm10, nan, %v587_v1  ;;  %v390_v40 = vsel %vm1111_vm7, 0, %v1110_v52  ;;  %v952_v15 = vmul.f32 %v951_v38, %v1703_v21  ;;  %v790_v25 = vadd.f32 1.0, %v789_v31 }
 0x11f   : > { %v590_v51 = vmul.f32 0.17677669, %v588_v41  ;;  %v391_v29 = vsub.s32 32, %v390_v40  ;;  %v395_v6 = vsub.s32 4294967266, %v390_v40  ;;  %v392_v26 = vshll.u32 %v383_v58, %v390_v40 }
 0x120   : > { %v798_v58 = vmul.f32 %v797_v11, %v1682_v36  ;;  %v800_v8 = vand.u32 3, %v783_v28  ;;  %v944_v50 = vadd.f32 1.0, %v943_v44  ;;  %v957_v4 = vxor.u32 2147483648, %v952_v15 }
 0x121   : > { %999 = vmatpush.msra.mxu1 %v590_v51  ;;  %1133 = vmatpush.msra.mxu3 %v590_v51  ;;  %v393_v12 = vshrl.u32 %v375_v30, %v391_v29  ;;  %v396_v24 = vadd.s32 127, %v395_v6  ;;  %v806_v39 = vxor.u32 2147483648, %v790_v25  ;;  %v406_v21 = vsel %vm283_vm11, %v405_v5, %v1694_v60 }
 0x122   : > { %v803_v41 = vxor.u32 2147483648, %v798_v58  ;;  %vm802_vm14 = vcmp.eq.s32.totalorder %v800_v8, 0  ;;  %v960_v33 = vxor.u32 2147483648, %v944_v50  ;;  %vm956_vm15 = vcmp.eq.s32.totalorder %v954_v16, 0 }
 0x123   : > { %v394_v53 = vor.u32 %v393_v12, %v392_v26  ;;  %v397_v61 = vshll.u32 %v396_v24, 23  ;;  %vm805_vm0 = vcmp.eq.s32.totalorder %v800_v8, 2  ;;  %v958_v40 = vsel %vm956_vm15, %v944_v50, %v957_v4 }
 0x124   : > { %v804_v17 = vsel %vm802_vm14, %v790_v25, %v803_v41  ;;  %vm959_vm12 = vcmp.eq.s32.totalorder %v954_v16, 2  ;;  %vm801_vm1 = vcmp.lt.s32.totalorder %v800_v8, 2  ;;  %v807_v30 = vsel %vm805_vm0, %v806_v39, %v798_v58 }
 0x125   : > { %v398_v14 = vor.u32 4788187, %v397_v61  ;;  %v401_v43 = vcvt.s32.f32 %v394_v53  ;;  %v808_v29 = vsel %vm801_vm1, %v804_v17, %v807_v30  ;;  %v408_v6 = vsel %vm1735_vm13, 0, %v406_v21 }
 0x126   : > { %vm955_vm2 = vcmp.lt.s32.totalorder %v954_v16, 2  ;;  %v961_v26 = vsel %vm959_vm12, %v960_v33, %v952_v15  ;;  %vm799_vm3 = vweird.f32 %v1270_v55  ;;  %v425_v54 = vand.u32 3, %v408_v6 }
 0x127   : > { %v399_v62 = vand.u32 2147483647, %v398_v14  ;;  %v962_v12 = vsel %vm955_vm2, %v958_v40, %v961_v26  ;;  %v809_v56 = vsel %vm799_vm3, nan, %v808_v29  ;;  %vm978_vm10 = vcmask 130048  }
 0x128   : > { %v963_v10 = vsel %vm953_vm4, nan, %v962_v12  ;;  %v964_v20 = vmul.f32 0.35355338, %v809_v56  ;;  %vm427_vm5 = vcmp.eq.s32.totalorder %v425_v54, 0  ;;  %vm430_vm6 = vcmp.eq.s32.totalorder %v425_v54, 2 }
 0x129   : > { %v402_v32 = vmul.f32 %v401_v43, %v399_v62  ;;  %v965_v47 = vmul.f32 0.35355338, %v963_v10  ;;  %vm426_vm8 = vcmp.lt.s32.totalorder %v425_v54, 2  ;;  %v974_v43 = vpop.permute.xlu2 %973  ;;  %vm1010_vm7 = vcmask 523264  }
 0x12a   : > { %v976_v49 = vmul.f32 %v969_v23, %v964_v20 }
 0x12b   : > { %v403_v35 = vxor.u32 2147483648, %v402_v32  ;;  %v977_v34 = vmul.f32 %v974_v43, %v965_v47 }
 0x12d   : > { %v404_v2 = vsel %vm283_vm11, %v403_v35, %v402_v32 }
 0x12e   : > { %v407_v27 = vsel %vm1735_vm13, %v1272_v57, %v404_v2 }
 0x12f   : > { %v409_v45 = vmul.f32 %v407_v27, %v407_v27 }
 0x131   : > { %v410_v1 = vmul.f32 -0.001358992, %v409_v45  ;;  %v417_v42 = vmul.f32 -0.00019511016, %v409_v45 }
 0x133   : > { %v411_v36 = vadd.f32 0.041655596, %v410_v1  ;;  %v418_v51 = vadd.f32 0.008332121, %v417_v42 }
 0x135   : > { %v412_v52 = vmul.f32 %v411_v36, %v409_v45  ;;  %v419_v63 = vmul.f32 %v418_v51, %v409_v45 }
 0x137   : > { %v413_v3 = vadd.f32 -0.4999988, %v412_v52  ;;  %v420_v59 = vadd.f32 -0.16666654, %v419_v63 }
 0x139   : > { %v414_v19 = vmul.f32 %v413_v3, %v409_v45  ;;  %v421_v9 = vmul.f32 %v420_v59, %v409_v45 }
 0x13b   : > { %v415_v60 = vadd.f32 1.0, %v414_v19  ;;  %v422_v24 = vadd.f32 1.0, %v421_v9 }
 0x13d   : > { %v423_v53 = vmul.f32 %v422_v24, %v407_v27  ;;  %v431_v61 = vxor.u32 2147483648, %v415_v60 }
 0x13f   : > { %v428_v14 = vxor.u32 2147483648, %v423_v53  ;;  %v432_v62 = vsel %vm430_vm6, %v431_v61, %v423_v53 }
 0x141   : > { %v429_v7 = vsel %vm427_vm5, %v415_v60, %v428_v14 }
 0x142   : > { %v433_v55 = vsel %vm426_vm8, %v429_v7, %v432_v62 }
 0x143   : > { %v434_v48 = vsel %vm424_vm9, nan, %v433_v55 }
 0x144   : > { %v589_v0 = vmul.f32 0.17677669, %v434_v48 }
 0x146   : > { %1000 = vmatpush.msra.mxu1 %v589_v0  ;;  %1134 = vmatpush.msra.mxu3 %v589_v0 }
 0x147   : > { %1123 = vmatmul.msk.f32.vlgmr.msra.gmra.mxu1 %vm978_vm10, %v976_v49  ;;  %1124 = vmatmul.msk.f32.vlgmr.msra.gmra.mxu3 %vm978_vm10, %v977_v34 }
 0x1c4   : > { %v1002_v32 = vpop.f32.mrf.mxu1 }
 0x1c5   : > { %v1008_v13 = vmul.f32 %v1002_v32, %v1002_v32 }
 0x1c7   : > { %v1011_v35 = vsel %vm1010_vm7, %v1008_v13, 0.0 }
 0x1ca   : > { %v1005_v11 = vpop.f32.mrf.mxu3 }
 0x1cb   : > { %v1009_v22 = vmul.f32 %v1005_v11, %v1005_v11 }
 0x1cd   : > { %v1012_v38 = vsel %vm1010_vm7, %v1009_v22, 0.0 }
 0x1ce   : > { %v1013_v31 = vadd.f32 %v1012_v38, %v1011_v35 }
 0x1d0   : > { %1014 = vadd.xlane.f32.xlu1 %v1013_v31 }
 0x243   : > { %v1015_v57 = vpop.xlane.xlu1 %1014 }
 0x244   : > { %v1016_v18 = vrot.slane %v1015_v57, 4 }
 0x246   : > { %v1017_v46 = vadd.f32 %v1016_v18, %v1015_v57 }
 0x248   : > { %v1018_v2 = vrot.slane %v1017_v46, 2 }
 0x24a   : > { %v1019_v44 = vadd.f32 %v1018_v2, %v1017_v46 }
 0x24c   : > { %v1020_v28 = vrot.slane %v1019_v44, 1 }
 0x24e   : > { %v1021_v58 = vadd.f32 %v1020_v28, %v1019_v44 }
 0x250   : > { %1135 = vpush %v1021_v58 }
 0x281   : > { %s1136_s14 = spop %1135 }
 0x282   : > { %v1023_v27 = vstv %s1136_s14 }
 0x283   : > { %1162 = vrsqrt.f32 %v1023_v27  ;;  %vm1031_vm11 = vcmp.eq.f32.partialorder %v1023_v27, inf  ;;  %v1034_v50 = vand.u32 2147483648, %v1023_v27  ;;  %vm1033_vm13 = vcmp.eq.f32.partialorder %v1023_v27, 0.0 }
 0x289   : > { %v1163_v45 = vpop.eup %1162 }
 0x28a   : > { %v1025_v37 = vmul.f32 %v1163_v45, %v1023_v27 }
 0x28c   : > { %v1026_v15 = vmul.f32 %v1163_v45, %v1025_v37 }
 0x28e   : > { %v1027_v25 = vmul.f32 0.5, %v1026_v15 }
 0x290   : > { %v1028_v8 = vsub.f32 1.5, %v1027_v25 }
 0x292   : > { %v1029_v1 = vmul.f32 %v1163_v45, %v1028_v8 }
 0x294   : > { %v1030_v42 = vmul.f32 %v1029_v1, %v1023_v27 }
 0x296   : > { %v1032_v41 = vsel %vm1031_vm11, %v1023_v27, %v1030_v42 }
 0x297   : > { %v1035_v5 = vsel %vm1033_vm13, %v1034_v50, %v1032_v41 }
 0x298   : > { %1137 = vpush %v1035_v5 }
 0x2c9   : > { %s1138_s20 = spop %1137 }
 0x2ca   : > { %v1037_v16 = vstv %s1138_s20 }
 0x2cb   : > { %1038 = vst [vmem:[%s240_s17] sm:$0x1] %v1037_v16 }
 0x2cc PF: > { %s15_s18 = sadd.s32 1, %s1170_s18  }
 0x2cd   : > { %p12_p4 = scmp.ge.s32.totalorder %s15_s18, 10  }
 0x2cf   :  { %14 = sbr.rel (!%p12_p4) target bundleno = 1 (0x1), region = 73 }

</bundles_post_ra>
